<compile_context>
chip_gen: v6e
topology: v6e:2x2x1
jax: 0.10.0
libtpu: 0.0.40
codegen_flags: <defaults>
</compile_context>

<pallas_src>
import jax
import jax.numpy as jnp
from jax.experimental import pallas as pl
from jax.experimental.pallas import tpu as pltpu


_SUB = 256  # rows per in-kernel compute sub-block (keeps the replicated x small)


def _round_up(a, b):
    return ((a + b - 1) // b) * b


def _loc_scale_fwd_kernel(x_ref, m_ref, s_ref, o_ref):
    # x_ref : (TN, p)     batch tile (p < 128 is lane-padded in VMEM)
    # m_ref : (1, K*p)    locations, lane-dense
    # s_ref : (1, K*p)    exp(-log_s), lane-dense (precomputed in wrapper)
    # o_ref : (TN, K*p)   lane-dense output tile (full-lane stores)
    tn, p = x_ref.shape
    kp = o_ref.shape[-1]
    K = kp // p
    sub = min(_SUB, tn)
    n_sub = tn // sub  # wrapper guarantees tn % sub == 0

    # Hoist parameter broadcasts out of the loop (JAX does not CSE broadcast_in_dim).
    m_b = jnp.broadcast_to(m_ref[...], (sub, kp))
    s_b = jnp.broadcast_to(s_ref[...], (sub, kp))

    @pl.loop(0, n_sub)
    def _(i):
        r0 = pl.multiple_of(i * sub, sub)
        x_sub = x_ref[pl.ds(r0, sub), :]            # (sub, p)
        x_b = jnp.tile(x_sub, (1, K))               # (sub, K*p) lane replication (XLU)
        o_ref[pl.ds(r0, sub), :] = ((x_b - m_b) * s_b).astype(o_ref.dtype)


def _choose_tile_n(N, p, Kp, in_itemsize, out_itemsize, vmem_budget_bytes):
    lanes_x = _round_up(p, 128)       # x block is lane-padded to 128 lanes in VMEM
    lanes_o = _round_up(Kp, 128)
    # Double-buffered x and out blocks dominate VMEM per row of tile.
    per_row = 2 * lanes_x * in_itemsize + 2 * lanes_o * out_itemsize
    # Fixed overhead: resident params (double-buffered) + in-kernel sub-block temps.
    fixed = 4 * lanes_o * 4 + 4 * _SUB * lanes_o * 4
    max_tile = max(_SUB, (vmem_budget_bytes - fixed) // per_row)
    max_tile = min((max_tile // _SUB) * _SUB, 32768)

    rows = _round_up(max(N, 1), _SUB)
    # Target >= 8 grid steps (>= 4 per TensorCore on v7x) while keeping tiles
    # >= ~2048 rows so HBM read / compute / HBM write streams stay overlapped.
    tile_n = max(min(2048, rows), _round_up(pl.cdiv(N, 8), _SUB))
    tile_n = min(tile_n, max_tile, rows)
    tile_n = max(_SUB, (tile_n // _SUB) * _SUB)

    # Prefer an even number of grid steps so both v7x TensorCores get equal work.
    steps = pl.cdiv(N, tile_n)
    if steps > 1 and steps % 2 == 1:
        alt = max(_SUB, _round_up(pl.cdiv(N, steps + 1), _SUB))
        if pl.cdiv(N, alt) % 2 == 0:
            tile_n = alt
    return tile_n


def location_scale_flow_forward(x, m, log_s, *, tile_n=None, out_dtype=None,
                                vmem_budget_bytes=24 * 1024 * 1024):
    """Pallas implementation of LocationScaleFlow.forward.

    x     : (..., p)  float32
    m     : (K, p)    float32
    log_s : (K, p)    float32
    returns (..., K, p) in out_dtype (defaults to x.dtype)
    """
    K, p = m.shape
    assert x.shape[-1] == p
    lead = x.shape[:-1]
    Kp = K * p

    x2 = x.reshape(-1, p)
    N = x2.shape[0]
    out_dtype = x2.dtype if out_dtype is None else out_dtype
    in_itemsize = jnp.dtype(x2.dtype).itemsize
    out_itemsize = jnp.dtype(out_dtype).itemsize

    if tile_n is None:
        tile_n = _choose_tile_n(N, p, Kp, in_itemsize, out_itemsize, vmem_budget_bytes)
    tile_n = _round_up(max(int(tile_n), _SUB), _SUB)
    assert tile_n % _SUB == 0

    # Lane-dense parameters; fold the divide into a multiply with exp(-log_s)
    # (computed once in the wrapper on a tiny K*p array).
    m_flat = m.reshape(1, Kp).astype(jnp.float32)
    s_inv_flat = jnp.exp(-log_s).reshape(1, Kp).astype(jnp.float32)

    grid = (pl.cdiv(N, tile_n),)   # ragged last block handled by Pallas (no pad/slice)

    out = pl.pallas_call(
        _loc_scale_fwd_kernel,
        out_shape=jax.ShapeDtypeStruct((N, Kp), out_dtype),
        grid_spec=pltpu.PrefetchScalarGridSpec(
            num_scalar_prefetch=0,
            grid=grid,
            in_specs=[
                pl.BlockSpec((tile_n, p), lambda i: (i, 0)),   # x tile
                pl.BlockSpec((1, Kp), lambda i: (0, 0)),       # m (resident)
                pl.BlockSpec((1, Kp), lambda i: (0, 0)),       # exp(-log_s) (resident)
            ],
            out_specs=pl.BlockSpec((tile_n, Kp), lambda i: (i, 0)),
        ),
        compiler_params=pltpu.CompilerParams(
            dimension_semantics=("parallel",),
            vmem_limit_bytes=48 * 1024 * 1024,
        ),
    )(x2, m_flat, s_inv_flat)

    return out.reshape(*lead, K, p)


if __name__ == "__main__":
    K, p = 4, 32
    batch, seq = 2, 8              # leading dims of x -> flattened N = 16

    key = jax.random.PRNGKey(0)
    k_m, k_x = jax.random.split(key)

    # Deterministic parameter init matching the module's __init__ shapes:
    #   m ~ randn(K, p), log_s = zeros(K, p)
    m = jax.random.normal(k_m, (K, p), dtype=jnp.float32)
    log_s = jnp.zeros((K, p), dtype=jnp.float32)

    x = jax.random.normal(k_x, (batch, seq, p), dtype=jnp.float32)

    out = location_scale_flow_forward(x, m, log_s)
    out = jax.block_until_ready(out)

    # reference check (plain JAX, mirrors the PyTorch forward)
    ref = (x[..., None, :] - m) / jnp.exp(log_s)
    assert out.shape == (batch, seq, K, p)
    assert jnp.allclose(out, ref, atol=1e-5, rtol=1e-5)

    print("KERNEL_OK")
</pallas_src>

<mosaic_0001>
module attributes {stable_mosaic.version = 11 : i64} {
  func.func @_loc_scale_fwd_kernel(%arg0: i32, %arg1: memref<256x32xf32, #tpu.memory_space<vmem>>, %arg2: memref<1x128xf32, #tpu.memory_space<vmem>>, %arg3: memref<1x128xf32, #tpu.memory_space<vmem>>, %arg4: memref<256x128xf32, #tpu.memory_space<vmem>>) attributes {dimension_semantics = [#tpu.dimension_semantics<parallel>], iteration_bounds = array<i64: 1>, scalar_prefetch = 0 : i64, scratch_operands = 0 : i64, tpu.core_type = #tpu.core_type<tc>, window_params = [{transform_indices = @transform_0, window_bounds = array<i64: 256, 32>}, {pipeline_mode = #tpu.pipeline_mode<synchronous>, transform_indices = @transform_1, window_bounds = array<i64: 1, 128>}, {pipeline_mode = #tpu.pipeline_mode<synchronous>, transform_indices = @transform_2, window_bounds = array<i64: 1, 128>}, {transform_indices = @transform_3, window_bounds = array<i64: 256, 128>}]} {
    %c0 = arith.constant 0 : index
    %c0_0 = arith.constant 0 : index
    %0 = vector.load %arg2[%c0, %c0_0] : memref<1x128xf32, #tpu.memory_space<vmem>>, vector<1x128xf32>
    %1 = vector.shape_cast %0 : vector<1x128xf32> to vector<1x128xf32>
    %2 = vector.broadcast %1 : vector<1x128xf32> to vector<256x128xf32>
    %c0_1 = arith.constant 0 : index
    %c0_2 = arith.constant 0 : index
    %3 = vector.load %arg3[%c0_1, %c0_2] : memref<1x128xf32, #tpu.memory_space<vmem>>, vector<1x128xf32>
    %4 = vector.shape_cast %3 : vector<1x128xf32> to vector<1x128xf32>
    %5 = vector.broadcast %4 : vector<1x128xf32> to vector<256x128xf32>
    %c0_i32 = arith.constant 0 : i32
    %c1_i32 = arith.constant 1 : i32
    %6 = arith.muli %c0_i32, %c1_i32 : i32
    %c0_i32_3 = arith.constant 0 : i32
    %7 = arith.addi %c0_i32_3, %6 : i32
    %c256_i32 = arith.constant 256 : i32
    %8 = arith.muli %7, %c256_i32 : i32
    %9 = tpu.assume_multiple %8, 256 : i32
    %10 = arith.index_cast %9 : i32 to index
    %c0_4 = arith.constant 0 : index
    %11 = vector.load %arg1[%10, %c0_4] : memref<256x32xf32, #tpu.memory_space<vmem>>, vector<256x32xf32>
    %12 = tpu.concatenate %11, %11, %11, %11 in 1 : vector<256x32xf32>, vector<256x32xf32>, vector<256x32xf32>, vector<256x32xf32> -> vector<256x128xf32>
    %13 = arith.subf %12, %2 : vector<256x128xf32>
    %14 = arith.mulf %13, %5 : vector<256x128xf32>
    %15 = arith.index_cast %9 : i32 to index
    %c0_5 = arith.constant 0 : index
    %16 = vector.load %arg4[%15, %c0_5] : memref<256x128xf32, #tpu.memory_space<vmem>>, vector<256x128xf32>
    tpu.vector_store %arg4[%15, %c0_5], %14 {strides = array<i32>} : memref<256x128xf32, #tpu.memory_space<vmem>>, vector<256x128xf32>,
    %c1_i32_6 = arith.constant 1 : i32
    return
  }
  func.func @transform_0(%arg0: i32) -> (i32, i32) {
    %c0_i32 = arith.constant 0 : i32
    %c0_i32_0 = arith.constant 0 : i32
    return %arg0, %c0_i32 : i32, i32
  }
  func.func @transform_1(%arg0: i32) -> (i32, i32) {
    %c0_i32 = arith.constant 0 : i32
    %c0_i32_0 = arith.constant 0 : i32
    %c0_i32_1 = arith.constant 0 : i32
    return %c0_i32, %c0_i32_0 : i32, i32
  }
  func.func @transform_2(%arg0: i32) -> (i32, i32) {
    %c0_i32 = arith.constant 0 : i32
    %c0_i32_0 = arith.constant 0 : i32
    %c0_i32_1 = arith.constant 0 : i32
    return %c0_i32, %c0_i32_0 : i32, i32
  }
  func.func @transform_3(%arg0: i32) -> (i32, i32) {
    %c0_i32 = arith.constant 0 : i32
    %c0_i32_0 = arith.constant 0 : i32
    return %arg0, %c0_i32 : i32, i32
  }
}

</mosaic_0001>

<bundles_post_ra>
// kernel: tpu_custom_call.1
= control target key start
LH: loop header
LB: loop body
LE: loop exit
PB: predicated region body
PF: predicated region fallthrough
CT: control target
= control target key end

     0   :  { %8 = vsyncpa [#allocation3], 0  ;;  %s1331_s0 = inlined_call_operand.hbm [shape: f32[16,32], index: 0, kind: input, shape index: {}]   ;;  %s1332_s1 = inlined_call_operand.vmem [shape: f32[1,128], index: 1, kind: input, shape index: {}]   ;;  %s1333_s2 = inlined_call_operand.vmem [shape: f32[1,128], index: 2, kind: input, shape index: {}]   ;;  %s1334_s3 = inlined_call_operand.hbm [shape: f32[16,128], index: 3, kind: output, shape index: {}]  }
   0x1   :  { %9 = vsyncpa [#allocation4], 0 }
   0x2   :  { %14 = vsyncadd [#allocation3], 3840  ;;  %s660_s12 = smov [#allocation2]  }
   0x3   :  { %s15_s13 = sshll.u32 %s660_s12, 4  ;;  %s16_s13 = int_to_ptr.vmem [resolvable:$true] %s15_s13 }
   0x4   :  { %s624_s14 = scalar_lea.vmem %s16_s13, 256  ;;  %s628_s15 = scalar_lea.vmem %s16_s13, 4096 }
   0x5   :  { %p625_p0 = scmp.ne.s32.totalorder %s16_s13, %s624_s14  ;;  %p629_p1 = scmp.lt.s32.totalorder %s16_s13, %s16_s13 }
   0x6   :  { %p630_p2 = scmp.lt.s32.totalorder %s628_s15, %s624_s14 }
   0x8   :  { %p631_p3 = por %p630_p2, %p629_p1 }
   0xa   :  { %p632_p4 = pnand %p631_p3, %p625_p0 }
   0xc   :  { %635 = shalt.err (!%p632_p4)
}
   0xd   :  { %s661_s16 = smov 128   ;;  %s662_s17 = smov 8  }
   0xe   :  { %21 = dma.hbm_to_vmem [thread:$0]  %s1331_s0, 256, %s16_s13, [#allocation3], %s661_s16, %s661_s16, %s662_s17  }
   0xf   :  { %656 = dma.done.wait [#allocation3], 4096  }
  0x10   :  { %657 = vsyncadd [#allocation3], 4294963200  ;;  %v693_v0 = vld [vmem:[#allocation2 + $0x10] sm:$0xff]  ;;  %v695_v1 = vld [vmem:[#allocation2] sm:$0xff]  ;;  %s663_s20 = smov 32   ;;  %s664_s0 = smov 64  }
  0x11   :  { %111 = vrot.lane.b32.xlu1 %v693_v0, %s663_s20  ;;  %107 = vrot.lane.b32.xlu0 %v695_v1, %s663_s20  ;;  %v701_v2 = vld [vmem:[#allocation2 + $0x18] sm:$0xff]  ;;  %v703_v3 = vld [vmem:[#allocation2 + $0x8] sm:$0xff]  ;;  %v711_v5 = vld [vmem:[#allocation2 + $0x20] sm:$0xff]  ;;  %s665_s21 = smov 96   ;;  %vm395_vm0 = vcmask 261120   ;;  %vm428_vm1 = vcmask 523264  }
  0x12   :  { %v709_v4 = vld [vmem:[#allocation2 + $0x28] sm:$0xff]  ;;  %v717_v6 = vld [vmem:[#allocation2 + $0x38] sm:$0xff]  ;;  %v719_v7 = vld [vmem:[#allocation2 + $0x30] sm:$0xff]  ;;  %vm461_vm2 = vcmask 785408  }
  0x13   :  { %v725_v8 = vld [vmem:[#allocation2 + $0x48] sm:$0xff]  ;;  %v727_v9 = vld [vmem:[#allocation2 + $0x40] sm:$0xff]  ;;  %v733_v10 = vld [vmem:[#allocation2 + $0x58] sm:$0xff] }
  0x14   :  { %v735_v11 = vld [vmem:[#allocation2 + $0x50] sm:$0xff]  ;;  %v741_v12 = vld [vmem:[#allocation2 + $0x68] sm:$0xff]  ;;  %v743_v13 = vld [vmem:[#allocation2 + $0x60] sm:$0xff] }
  0x15   :  { %113 = vrot.lane.b32.xlu1 %v701_v2, %s663_s20  ;;  %109 = vrot.lane.b32.xlu0 %v703_v3, %s663_s20  ;;  %v749_v14 = vld [vmem:[#allocation2 + $0x78] sm:$0xff]  ;;  %v751_v15 = vld [vmem:[#allocation2 + $0x70] sm:$0xff]  ;;  %v757_v16 = vld [vmem:[#allocation2 + $0x88] sm:$0xff] }
  0x16   :  { %v759_v17 = vld [vmem:[#allocation2 + $0x80] sm:$0xff]  ;;  %v765_v18 = vld [vmem:[#allocation2 + $0x98] sm:$0xff]  ;;  %v767_v19 = vld [vmem:[#allocation2 + $0x90] sm:$0xff] }
  0x17   :  { %1349 = vst [vmem:[#allocation8_spill] sm:$0xff] %v765_v18  ;;  %1350 = vst [vmem:[#allocation9_spill] sm:$0xff] %v767_v19  ;;  %v773_v20 = vld [vmem:[#allocation2 + $0xa8] sm:$0xff]  ;;  %v775_v21 = vld [vmem:[#allocation2 + $0xa0] sm:$0xff] }
  0x18   :  { %1351 = vst [vmem:[#allocation10_spill] sm:$0xff] %v773_v20  ;;  %1352 = vst [vmem:[#allocation11_spill] sm:$0xff] %v775_v21  ;;  %v781_v22 = vld [vmem:[#allocation2 + $0xb8] sm:$0xff]  ;;  %v783_v23 = vld [vmem:[#allocation2 + $0xb0] sm:$0xff] }
  0x19   :  { %117 = vrot.lane.b32.xlu1 %v709_v4, %s663_s20  ;;  %115 = vrot.lane.b32.xlu0 %v711_v5, %s663_s20  ;;  %1353 = vst [vmem:[#allocation12_spill] sm:$0xff] %v781_v22  ;;  %1354 = vst [vmem:[#allocation13_spill] sm:$0xff] %v783_v23  ;;  %v789_v24 = vld [vmem:[#allocation2 + $0xc8] sm:$0xff]  ;;  %v791_v25 = vld [vmem:[#allocation2 + $0xc0] sm:$0xff] }
  0x1a   :  { %1355 = vst [vmem:[#allocation14_spill] sm:$0xff] %v789_v24  ;;  %1356 = vst [vmem:[#allocation15_spill] sm:$0xff] %v791_v25  ;;  %v797_v26 = vld [vmem:[#allocation2 + $0xd8] sm:$0xff]  ;;  %v799_v27 = vld [vmem:[#allocation2 + $0xd0] sm:$0xff] }
  0x1b   :  { %1357 = vst [vmem:[#allocation16_spill] sm:$0xff] %v797_v26  ;;  %1358 = vst [vmem:[#allocation17_spill] sm:$0xff] %v799_v27  ;;  %v805_v28 = vld [vmem:[#allocation2 + $0xe8] sm:$0xff]  ;;  %v807_v29 = vld [vmem:[#allocation2 + $0xe0] sm:$0xff] }
  0x1c   :  { %1359 = vst [vmem:[#allocation18_spill] sm:$0xff] %v805_v28  ;;  %1360 = vst [vmem:[#allocation19_spill] sm:$0xff] %v807_v29  ;;  %v813_v30 = vld [vmem:[#allocation2 + $0xf8] sm:$0xff]  ;;  %v815_v31 = vld [vmem:[#allocation2 + $0xf0] sm:$0xff] }
  0x1d   :  { %121 = vrot.lane.b32.xlu1 %v717_v6, %s663_s20  ;;  %119 = vrot.lane.b32.xlu0 %v719_v7, %s663_s20  ;;  %1361 = vst [vmem:[#allocation20_spill] sm:$0xff] %v813_v30  ;;  %1362 = vst [vmem:[#allocation21_spill] sm:$0xff] %v815_v31 }
  0x21   :  { %125 = vrot.lane.b32.xlu1 %v725_v8, %s663_s20  ;;  %123 = vrot.lane.b32.xlu0 %v727_v9, %s663_s20 }
  0x25   :  { %129 = vrot.lane.b32.xlu1 %v733_v10, %s663_s20  ;;  %127 = vrot.lane.b32.xlu0 %v735_v11, %s663_s20 }
  0x29   :  { %133 = vrot.lane.b32.xlu1 %v741_v12, %s663_s20  ;;  %131 = vrot.lane.b32.xlu0 %v743_v13, %s663_s20 }
  0x2d   :  { %137 = vrot.lane.b32.xlu1 %v749_v14, %s663_s20  ;;  %135 = vrot.lane.b32.xlu0 %v751_v15, %s663_s20 }
  0x31   :  { %141 = vrot.lane.b32.xlu1 %v757_v16, %s663_s20  ;;  %139 = vrot.lane.b32.xlu0 %v759_v17, %s663_s20 }
  0x35   :  { %145 = vrot.lane.b32.xlu1 %v765_v18, %s663_s20  ;;  %143 = vrot.lane.b32.xlu0 %v767_v19, %s663_s20 }
  0x39   :  { %149 = vrot.lane.b32.xlu1 %v773_v20, %s663_s20  ;;  %147 = vrot.lane.b32.xlu0 %v775_v21, %s663_s20 }
  0x3d   :  { %153 = vrot.lane.b32.xlu1 %v781_v22, %s663_s20  ;;  %151 = vrot.lane.b32.xlu0 %v783_v23, %s663_s20 }
  0x41   :  { %157 = vrot.lane.b32.xlu1 %v789_v24, %s663_s20  ;;  %155 = vrot.lane.b32.xlu0 %v791_v25, %s663_s20 }
  0x45   :  { %161 = vrot.lane.b32.xlu1 %v797_v26, %s663_s20  ;;  %159 = vrot.lane.b32.xlu0 %v799_v27, %s663_s20 }
  0x49   :  { %165 = vrot.lane.b32.xlu1 %v805_v28, %s663_s20  ;;  %163 = vrot.lane.b32.xlu0 %v807_v29, %s663_s20 }
  0x4d   :  { %169 = vrot.lane.b32.xlu1 %v813_v30, %s663_s20  ;;  %167 = vrot.lane.b32.xlu0 %v815_v31, %s663_s20 }
  0x51   :  { %205 = vrot.lane.b32.xlu1 %v703_v3, %s664_s0  ;;  %203 = vrot.lane.b32.xlu0 %v695_v1, %s664_s0 }
  0x55   :  { %209 = vrot.lane.b32.xlu1 %v701_v2, %s664_s0  ;;  %207 = vrot.lane.b32.xlu0 %v693_v0, %s664_s0 }
  0x59   :  { %213 = vrot.lane.b32.xlu1 %v709_v4, %s664_s0  ;;  %211 = vrot.lane.b32.xlu0 %v711_v5, %s664_s0 }
  0x5d   :  { %217 = vrot.lane.b32.xlu1 %v717_v6, %s664_s0  ;;  %215 = vrot.lane.b32.xlu0 %v719_v7, %s664_s0 }
  0x61   :  { %221 = vrot.lane.b32.xlu1 %v725_v8, %s664_s0  ;;  %219 = vrot.lane.b32.xlu0 %v727_v9, %s664_s0 }
  0x65   :  { %225 = vrot.lane.b32.xlu1 %v733_v10, %s664_s0  ;;  %223 = vrot.lane.b32.xlu0 %v735_v11, %s664_s0 }
  0x69   :  { %229 = vrot.lane.b32.xlu1 %v741_v12, %s664_s0  ;;  %227 = vrot.lane.b32.xlu0 %v743_v13, %s664_s0 }
  0x6d   :  { %233 = vrot.lane.b32.xlu1 %v749_v14, %s664_s0  ;;  %231 = vrot.lane.b32.xlu0 %v751_v15, %s664_s0 }
  0x71   :  { %237 = vrot.lane.b32.xlu1 %v757_v16, %s664_s0  ;;  %235 = vrot.lane.b32.xlu0 %v759_v17, %s664_s0 }
  0x75   :  { %241 = vrot.lane.b32.xlu1 %v765_v18, %s664_s0  ;;  %239 = vrot.lane.b32.xlu0 %v767_v19, %s664_s0 }
  0x79   :  { %245 = vrot.lane.b32.xlu1 %v773_v20, %s664_s0  ;;  %243 = vrot.lane.b32.xlu0 %v775_v21, %s664_s0 }
  0x7d   :  { %249 = vrot.lane.b32.xlu1 %v781_v22, %s664_s0  ;;  %247 = vrot.lane.b32.xlu0 %v783_v23, %s664_s0 }
  0x81   :  { %253 = vrot.lane.b32.xlu1 %v789_v24, %s664_s0  ;;  %251 = vrot.lane.b32.xlu0 %v791_v25, %s664_s0 }
  0x83   :  { %v873_v32 = vpop.permute.xlu1 %111  ;;  %v875_v33 = vpop.permute.xlu0 %107 }
  0x85   :  { %257 = vrot.lane.b32.xlu1 %v797_v26, %s664_s0  ;;  %255 = vrot.lane.b32.xlu0 %v799_v27, %s664_s0 }
  0x87   :  { %v881_v34 = vpop.permute.xlu1 %113  ;;  %v883_v35 = vpop.permute.xlu0 %109 }
  0x89   :  { %261 = vrot.lane.b32.xlu1 %v805_v28, %s664_s0  ;;  %259 = vrot.lane.b32.xlu0 %v807_v29, %s664_s0 }
  0x8b   :  { %v889_v36 = vpop.permute.xlu1 %117  ;;  %v891_v37 = vpop.permute.xlu0 %115 }
  0x8d   :  { %265 = vrot.lane.b32.xlu1 %v813_v30, %s664_s0  ;;  %263 = vrot.lane.b32.xlu0 %v815_v31, %s664_s0 }
  0x8f   :  { %v897_v38 = vpop.permute.xlu1 %121  ;;  %v899_v39 = vpop.permute.xlu0 %119 }
  0x91   :  { %301 = vrot.lane.b32.xlu1 %v703_v3, %s665_s21  ;;  %299 = vrot.lane.b32.xlu0 %v695_v1, %s665_s21 }
  0x93   :  { %v905_v40 = vpop.permute.xlu1 %125  ;;  %v907_v41 = vpop.permute.xlu0 %123 }
  0x95   :  { %305 = vrot.lane.b32.xlu1 %v701_v2, %s665_s21  ;;  %303 = vrot.lane.b32.xlu0 %v693_v0, %s665_s21 }
  0x97   :  { %v913_v42 = vpop.permute.xlu1 %129  ;;  %v915_v43 = vpop.permute.xlu0 %127 }
  0x99   :  { %309 = vrot.lane.b32.xlu1 %v709_v4, %s665_s21  ;;  %307 = vrot.lane.b32.xlu0 %v711_v5, %s665_s21 }
  0x9b   :  { %v921_v44 = vpop.permute.xlu1 %133  ;;  %v923_v45 = vpop.permute.xlu0 %131 }
  0x9d   :  { %313 = vrot.lane.b32.xlu1 %v717_v6, %s665_s21  ;;  %311 = vrot.lane.b32.xlu0 %v719_v7, %s665_s21 }
  0x9f   :  { %v929_v46 = vpop.permute.xlu1 %137  ;;  %v931_v47 = vpop.permute.xlu0 %135 }
  0xa1   :  { %317 = vrot.lane.b32.xlu1 %v725_v8, %s665_s21  ;;  %315 = vrot.lane.b32.xlu0 %v727_v9, %s665_s21 }
  0xa3   :  { %v937_v48 = vpop.permute.xlu1 %141  ;;  %v939_v49 = vpop.permute.xlu0 %139 }
  0xa5   :  { %321 = vrot.lane.b32.xlu1 %v733_v10, %s665_s21  ;;  %319 = vrot.lane.b32.xlu0 %v735_v11, %s665_s21 }
  0xa7   :  { %v945_v50 = vpop.permute.xlu1 %145  ;;  %v947_v51 = vpop.permute.xlu0 %143 }
  0xa8   :  { %1363 = vst [vmem:[#allocation22_spill] sm:$0xff] %v945_v50  ;;  %1364 = vst [vmem:[#allocation23_spill] sm:$0xff] %v947_v51 }
  0xa9   :  { %325 = vrot.lane.b32.xlu1 %v741_v12, %s665_s21  ;;  %323 = vrot.lane.b32.xlu0 %v743_v13, %s665_s21 }
  0xab   :  { %v953_v52 = vpop.permute.xlu1 %149  ;;  %v955_v53 = vpop.permute.xlu0 %147 }
  0xac   :  { %1365 = vst [vmem:[#allocation24_spill] sm:$0xff] %v953_v52  ;;  %1366 = vst [vmem:[#allocation25_spill] sm:$0xff] %v955_v53 }
  0xad   :  { %329 = vrot.lane.b32.xlu1 %v749_v14, %s665_s21  ;;  %327 = vrot.lane.b32.xlu0 %v751_v15, %s665_s21 }
  0xaf   :  { %v961_v54 = vpop.permute.xlu1 %153  ;;  %v963_v55 = vpop.permute.xlu0 %151 }
  0xb0   :  { %1367 = vst [vmem:[#allocation26_spill] sm:$0xff] %v961_v54  ;;  %1368 = vst [vmem:[#allocation27_spill] sm:$0xff] %v963_v55 }
  0xb1   :  { %333 = vrot.lane.b32.xlu1 %v757_v16, %s665_s21  ;;  %331 = vrot.lane.b32.xlu0 %v759_v17, %s665_s21 }
  0xb3   :  { %v969_v56 = vpop.permute.xlu1 %157  ;;  %v971_v57 = vpop.permute.xlu0 %155 }
  0xb4   :  { %1369 = vst [vmem:[#allocation28_spill] sm:$0xff] %v969_v56  ;;  %1370 = vst [vmem:[#allocation29_spill] sm:$0xff] %v971_v57 }
  0xb5   :  { %337 = vrot.lane.b32.xlu1 %v765_v18, %s665_s21  ;;  %335 = vrot.lane.b32.xlu0 %v767_v19, %s665_s21 }
  0xb7   :  { %v977_v58 = vpop.permute.xlu1 %161  ;;  %v979_v59 = vpop.permute.xlu0 %159 }
  0xb8   :  { %1371 = vst [vmem:[#allocation30_spill] sm:$0xff] %v977_v58  ;;  %1372 = vst [vmem:[#allocation31_spill] sm:$0xff] %v979_v59 }
  0xb9   :  { %341 = vrot.lane.b32.xlu1 %v773_v20, %s665_s21  ;;  %339 = vrot.lane.b32.xlu0 %v775_v21, %s665_s21 }
  0xbb   :  { %v985_v60 = vpop.permute.xlu1 %165  ;;  %v987_v61 = vpop.permute.xlu0 %163 }
  0xbc   :  { %1373 = vst [vmem:[#allocation32_spill] sm:$0xff] %v985_v60  ;;  %1374 = vst [vmem:[#allocation33_spill] sm:$0xff] %v987_v61 }
  0xbd   :  { %345 = vrot.lane.b32.xlu1 %v781_v22, %s665_s21  ;;  %343 = vrot.lane.b32.xlu0 %v783_v23, %s665_s21 }
  0xbf   :  { %v993_v62 = vpop.permute.xlu1 %169  ;;  %v995_v63 = vpop.permute.xlu0 %167 }
  0xc0   :  { %1375 = vst [vmem:[#allocation34_spill] sm:$0xff] %v993_v62  ;;  %1376 = vst [vmem:[#allocation35_spill] sm:$0xff] %v995_v63 }
  0xc1   :  { %349 = vrot.lane.b32.xlu1 %v789_v24, %s665_s21  ;;  %347 = vrot.lane.b32.xlu0 %v791_v25, %s665_s21 }
  0xc3   :  { %v206_v59 = vpop.permute.xlu1 %205  ;;  %v204_v60 = vpop.permute.xlu0 %203 }
  0xc5   :  { %353 = vrot.lane.b32.xlu1 %v797_v26, %s665_s21  ;;  %351 = vrot.lane.b32.xlu0 %v799_v27, %s665_s21 }
  0xc7   :  { %v210_v61 = vpop.permute.xlu1 %209  ;;  %v208_v58 = vpop.permute.xlu0 %207 }
  0xc9   :  { %357 = vrot.lane.b32.xlu1 %v805_v28, %s665_s21  ;;  %355 = vrot.lane.b32.xlu0 %v807_v29, %s665_s21 }
  0xcb   :  { %v214_v63 = vpop.permute.xlu1 %213  ;;  %v212_v62 = vpop.permute.xlu0 %211 }
  0xcd   :  { %361 = vrot.lane.b32.xlu1 %v813_v30, %s665_s21  ;;  %359 = vrot.lane.b32.xlu0 %v815_v31, %s665_s21 }
  0xcf   :  { %v1013_v26 = vpop.permute.xlu1 %217  ;;  %v1015_v25 = vpop.permute.xlu0 %215 }
  0xd3   :  { %v1017_v27 = vpop.permute.xlu1 %221  ;;  %v1019_v57 = vpop.permute.xlu0 %219 }
  0xd7   :  { %v1021_v28 = vpop.permute.xlu1 %225  ;;  %v1023_v24 = vpop.permute.xlu0 %223 }
  0xdb   :  { %v1025_v29 = vpop.permute.xlu1 %229  ;;  %v1027_v56 = vpop.permute.xlu0 %227 }
  0xdf   :  { %v1029_v30 = vpop.permute.xlu1 %233  ;;  %v1031_v23 = vpop.permute.xlu0 %231 }
  0xe3   :  { %v1033_v31 = vpop.permute.xlu1 %237  ;;  %v1035_v55 = vpop.permute.xlu0 %235 }
  0xe4   :  { %1377 = vst [vmem:[#allocation36_spill] sm:$0xff] %v1035_v55 }
  0xe7   :  { %v1037_v22 = vpop.permute.xlu1 %241  ;;  %v1039_v54 = vpop.permute.xlu0 %239 }
  0xe8   :  { %1378 = vst [vmem:[#allocation37_spill] sm:$0xff] %v1037_v22 }
  0xeb   :  { %v1041_v21 = vpop.permute.xlu1 %245  ;;  %v1043_v53 = vpop.permute.xlu0 %243 }
  0xec   :  { %1379 = vst [vmem:[#allocation38_spill] sm:$0xff] %v1041_v21  ;;  %1380 = vst [vmem:[#allocation39_spill] sm:$0xff] %v1043_v53 }
  0xef   :  { %v1045_v20 = vpop.permute.xlu1 %249  ;;  %v1047_v52 = vpop.permute.xlu0 %247 }
  0xf3   :  { %v1049_v19 = vpop.permute.xlu1 %253  ;;  %v1051_v51 = vpop.permute.xlu0 %251 }
  0xf4   :  { %1381 = vst [vmem:[#allocation40_spill] sm:$0xff] %v1049_v19  ;;  %1382 = vst [vmem:[#allocation41_spill] sm:$0xff] %v1051_v51  ;;  %v396_v19 = vsel %vm395_vm0, %v695_v1, %v875_v33  ;;  %v1081_v51 = vld [vmem:[%s1333_s2] ss:$0 sm:$0xff] }
  0xf7   :  { %v1053_v18 = vpop.permute.xlu1 %257  ;;  %v1055_v50 = vpop.permute.xlu0 %255 }
  0xf8   :  { %1383 = vst [vmem:[#allocation42_spill] sm:$0xff] %v1053_v18  ;;  %1384 = vst [vmem:[#allocation43_spill] sm:$0xff] %v1055_v50  ;;  %v397_v18 = vsel %vm395_vm0, %v703_v3, %v883_v35 }
  0xfb   :  { %v1057_v55 = vpop.permute.xlu1 %261  ;;  %v1059_v22 = vpop.permute.xlu0 %259 }
  0xfc   :  { %1385 = vst [vmem:[#allocation44_spill] sm:$0xff] %v1057_v55  ;;  %1386 = vst [vmem:[#allocation45_spill] sm:$0xff] %v1059_v22  ;;  %v1074_v55 = vld [vmem:[%s1332_s1] ss:$0 sm:$0xff]  ;;  %v430_v22 = vsel %vm428_vm1, %v397_v18, %v206_v59  ;;  %v398_v18 = vsel %vm395_vm0, %v693_v0, %v873_v32  ;;  %v401_v32 = vsel %vm395_vm0, %v709_v4, %v889_v36 }
  0xfd   :  { %v403_v36 = vsel %vm395_vm0, %v717_v6, %v897_v38 }
  0xff   :  { %v1061_v21 = vpop.permute.xlu1 %265  ;;  %v1063_v53 = vpop.permute.xlu0 %263 }
 0x100   :  { %1387 = vst [vmem:[#allocation46_spill] sm:$0xff] %v1061_v21  ;;  %1388 = vst [vmem:[#allocation47_spill] sm:$0xff] %v1063_v53  ;;  %v429_v21 = vsel %vm428_vm1, %v396_v19, %v204_v60  ;;  %v399_v19 = vsel %vm395_vm0, %v701_v2, %v881_v34  ;;  %v431_v60 = vsel %vm428_vm1, %v398_v18, %v208_v58 }
 0x101   :  { %v432_v59 = vsel %vm428_vm1, %v399_v19, %v210_v61  ;;  %v400_v34 = vsel %vm395_vm0, %v711_v5, %v891_v37  ;;  %v434_v58 = vsel %vm428_vm1, %v401_v32, %v214_v63  ;;  %v402_v37 = vsel %vm395_vm0, %v719_v7, %v899_v39 }
 0x102   :  { %v433_v61 = vsel %vm428_vm1, %v400_v34, %v212_v62  ;;  %v436_v62 = vsel %vm428_vm1, %v403_v36, %v1013_v26  ;;  %v435_v63 = vsel %vm428_vm1, %v402_v37, %v1015_v25  ;;  %v405_v25 = vsel %vm395_vm0, %v725_v8, %v905_v40 }
 0x103   :  { %v302_v53 = vpop.permute.xlu1 %301  ;;  %v300_v50 = vpop.permute.xlu0 %299  ;;  %v404_v26 = vsel %vm395_vm0, %v727_v9, %v907_v41  ;;  %v438_v39 = vsel %vm428_vm1, %v405_v25, %v1017_v27  ;;  %v407_v27 = vsel %vm395_vm0, %v733_v10, %v913_v42  ;;  %v406_v41 = vsel %vm395_vm0, %v735_v11, %v915_v43 }
 0x104   :  { %v463_v1 = vsel %vm461_vm2, %v430_v22, %v302_v53  ;;  %v462_v3 = vsel %vm461_vm2, %v429_v21, %v300_v50 }
 0x105   :  { %v495_v33 = vsub.f32 %v463_v1, %v1074_v55  ;;  %v494_v35 = vsub.f32 %v462_v3, %v1074_v55 }
 0x107   :  { %v527_v22 = vmul.f32 %v1081_v51, %v495_v33  ;;  %v526_v21 = vmul.f32 %v1081_v51, %v494_v35  ;;  %v306_v50 = vpop.permute.xlu1 %305  ;;  %v304_v53 = vpop.permute.xlu0 %303 }
 0x108   :  { %v465_v1 = vsel %vm461_vm2, %v432_v59, %v306_v50  ;;  %v464_v3 = vsel %vm461_vm2, %v431_v60, %v304_v53 }
 0x109   :  { %559 = vst [vmem:[#allocation5 + $0x8] sm:$0xff] %v527_v22  ;;  %558 = vst [vmem:[#allocation5] sm:$0xff] %v526_v21  ;;  %v497_v0 = vsub.f32 %v465_v1, %v1074_v55  ;;  %v496_v2 = vsub.f32 %v464_v3, %v1074_v55  ;;  %v437_v3 = vsel %vm428_vm1, %v404_v26, %v1019_v57 }
 0x10a   :  { %v440_v57 = vsel %vm428_vm1, %v407_v27, %v1021_v28  ;;  %v408_v28 = vsel %vm395_vm0, %v743_v13, %v923_v45  ;;  %v410_v45 = vsel %vm395_vm0, %v751_v15, %v931_v47 }
 0x10b   :  { %v529_v33 = vmul.f32 %v1081_v51, %v497_v0  ;;  %v528_v35 = vmul.f32 %v1081_v51, %v496_v2  ;;  %v310_v18 = vpop.permute.xlu1 %309  ;;  %v308_v19 = vpop.permute.xlu0 %307 }
 0x10c   :  { %v467_v59 = vsel %vm461_vm2, %v434_v58, %v310_v18  ;;  %v466_v60 = vsel %vm461_vm2, %v433_v61, %v308_v19  ;;  %v439_v61 = vsel %vm428_vm1, %v406_v41, %v1023_v24  ;;  %v409_v24 = vsel %vm395_vm0, %v741_v12, %v921_v44 }
 0x10d   :  { %561 = vst [vmem:[#allocation5 + $0x18] sm:$0xff] %v529_v33  ;;  %560 = vst [vmem:[#allocation5 + $0x10] sm:$0xff] %v528_v35  ;;  %v499_v4 = vsub.f32 %v467_v59, %v1074_v55  ;;  %v498_v5 = vsub.f32 %v466_v60, %v1074_v55  ;;  %v442_v43 = vsel %vm428_vm1, %v409_v24, %v1025_v29  ;;  %v1399_v24 = vld [vmem:[#allocation38_spill] sm:$0xff] }
 0x10e   :  { %v441_v60 = vsel %vm428_vm1, %v408_v28, %v1027_v56  ;;  %v411_v29 = vsel %vm395_vm0, %v749_v14, %v929_v46 }
 0x10f   :  { %v531_v22 = vmul.f32 %v1081_v51, %v499_v4  ;;  %v530_v21 = vmul.f32 %v1081_v51, %v498_v5  ;;  %v314_v50 = vpop.permute.xlu1 %313  ;;  %v312_v53 = vpop.permute.xlu0 %311  ;;  %v444_v56 = vsel %vm428_vm1, %v411_v29, %v1029_v30  ;;  %v412_v30 = vsel %vm395_vm0, %v759_v17, %v939_v49  ;;  %v1391_v49 = vld [vmem:[#allocation8_spill] sm:$0xff]  ;;  %v1401_v29 = vld [vmem:[#allocation26_spill] sm:$0xff] }
 0x110   :  { %v469_v1 = vsel %vm461_vm2, %v436_v62, %v314_v50  ;;  %v468_v6 = vsel %vm461_vm2, %v435_v63, %v312_v53  ;;  %v443_v63 = vsel %vm428_vm1, %v410_v45, %v1031_v23  ;;  %v413_v23 = vsel %vm395_vm0, %v757_v16, %v937_v48  ;;  %v1402_v45 = vld [vmem:[#allocation12_spill] sm:$0xff] }
 0x111   :  { %563 = vst [vmem:[#allocation5 + $0x28] sm:$0xff] %v531_v22  ;;  %562 = vst [vmem:[#allocation5 + $0x20] sm:$0xff] %v530_v21  ;;  %v501_v7 = vsub.f32 %v469_v1, %v1074_v55  ;;  %v500_v38 = vsub.f32 %v468_v6, %v1074_v55  ;;  %v446_v47 = vsel %vm428_vm1, %v413_v23, %v1033_v31  ;;  %v1389_v6 = vld [vmem:[#allocation36_spill] sm:$0xff]  ;;  %v1390_v31 = vld [vmem:[#allocation22_spill] sm:$0xff] }
 0x113   :  { %v533_v0 = vmul.f32 %v1081_v51, %v501_v7  ;;  %v532_v2 = vmul.f32 %v1081_v51, %v500_v38  ;;  %v318_v32 = vpop.permute.xlu1 %317  ;;  %v316_v34 = vpop.permute.xlu0 %315  ;;  %v445_v7 = vsel %vm428_vm1, %v412_v30, %v1389_v6 }
 0x114   :  { %v471_v58 = vsel %vm461_vm2, %v438_v39, %v318_v32  ;;  %v470_v8 = vsel %vm461_vm2, %v437_v3, %v316_v34  ;;  %v1393_v32 = vld [vmem:[#allocation9_spill] sm:$0xff] }
 0x115   :  { %565 = vst [vmem:[#allocation5 + $0x38] sm:$0xff] %v533_v0  ;;  %564 = vst [vmem:[#allocation5 + $0x30] sm:$0xff] %v532_v2  ;;  %v503_v9 = vsub.f32 %v471_v58, %v1074_v55  ;;  %v502_v40 = vsub.f32 %v470_v8, %v1074_v55  ;;  %v415_v0 = vsel %vm395_vm0, %v1391_v49, %v1390_v31  ;;  %v1392_v2 = vld [vmem:[#allocation23_spill] sm:$0xff]  ;;  %v1394_v58 = vld [vmem:[#allocation37_spill] sm:$0xff] }
 0x116   :  { %v414_v34 = vsel %vm395_vm0, %v1393_v32, %v1392_v2  ;;  %v448_v8 = vsel %vm428_vm1, %v415_v0, %v1394_v58 }
 0x117   :  { %v535_v33 = vmul.f32 %v1081_v51, %v503_v9  ;;  %v534_v35 = vmul.f32 %v1081_v51, %v502_v40  ;;  %v322_v18 = vpop.permute.xlu1 %321  ;;  %v320_v19 = vpop.permute.xlu0 %319  ;;  %v447_v9 = vsel %vm428_vm1, %v414_v34, %v1039_v54 }
 0x118   :  { %v473_v59 = vsel %vm461_vm2, %v440_v57, %v322_v18  ;;  %v472_v10 = vsel %vm461_vm2, %v439_v61, %v320_v19  ;;  %v1395_v19 = vld [vmem:[#allocation24_spill] sm:$0xff] }
 0x119   :  { %567 = vst [vmem:[#allocation5 + $0x48] sm:$0xff] %v535_v33  ;;  %566 = vst [vmem:[#allocation5 + $0x40] sm:$0xff] %v534_v35  ;;  %v505_v11 = vsub.f32 %v473_v59, %v1074_v55  ;;  %v504_v42 = vsub.f32 %v472_v10, %v1074_v55  ;;  %v1396_v59 = vld [vmem:[#allocation10_spill] sm:$0xff]  ;;  %v1397_v10 = vld [vmem:[#allocation25_spill] sm:$0xff] }
 0x11a   :  { %v417_v54 = vsel %vm395_vm0, %v1396_v59, %v1395_v19 }
 0x11b   :  { %v537_v4 = vmul.f32 %v1081_v51, %v505_v11  ;;  %v536_v5 = vmul.f32 %v1081_v51, %v504_v42  ;;  %v326_v36 = vpop.permute.xlu1 %325  ;;  %v324_v37 = vpop.permute.xlu0 %323  ;;  %v1398_v11 = vld [vmem:[#allocation11_spill] sm:$0xff]  ;;  %v450_v28 = vsel %vm428_vm1, %v417_v54, %v1399_v24 }
 0x11c   :  { %v475_v62 = vsel %vm461_vm2, %v442_v43, %v326_v36  ;;  %v474_v12 = vsel %vm461_vm2, %v441_v60, %v324_v37  ;;  %v416_v42 = vsel %vm395_vm0, %v1398_v11, %v1397_v10  ;;  %v1400_v43 = vld [vmem:[#allocation39_spill] sm:$0xff] }
 0x11d   :  { %569 = vst [vmem:[#allocation5 + $0x58] sm:$0xff] %v537_v4  ;;  %568 = vst [vmem:[#allocation5 + $0x50] sm:$0xff] %v536_v5  ;;  %v507_v13 = vsub.f32 %v475_v62, %v1074_v55  ;;  %v506_v44 = vsub.f32 %v474_v12, %v1074_v55  ;;  %v449_v60 = vsel %vm428_vm1, %v416_v42, %v1400_v43  ;;  %v1417_v43 = vld [vmem:[#allocation32_spill] sm:$0xff] }
 0x11f   :  { %v539_v22 = vmul.f32 %v1081_v51, %v507_v13  ;;  %v538_v21 = vmul.f32 %v1081_v51, %v506_v44  ;;  %v330_v50 = vpop.permute.xlu1 %329  ;;  %v328_v53 = vpop.permute.xlu0 %327 }
 0x120   :  { %v477_v1 = vsel %vm461_vm2, %v444_v56, %v330_v50  ;;  %v476_v14 = vsel %vm461_vm2, %v443_v63, %v328_v53  ;;  %v419_v56 = vsel %vm395_vm0, %v1402_v45, %v1401_v29  ;;  %v1403_v63 = vld [vmem:[#allocation27_spill] sm:$0xff] }
 0x121   :  { %571 = vst [vmem:[#allocation5 + $0x68] sm:$0xff] %v539_v22  ;;  %570 = vst [vmem:[#allocation5 + $0x60] sm:$0xff] %v538_v21  ;;  %v509_v15 = vsub.f32 %v477_v1, %v1074_v55  ;;  %v508_v46 = vsub.f32 %v476_v14, %v1074_v55  ;;  %v1404_v22 = vld [vmem:[#allocation13_spill] sm:$0xff]  ;;  %v452_v50 = vsel %vm428_vm1, %v419_v56, %v1045_v20  ;;  %v1405_v20 = vld [vmem:[#allocation28_spill] sm:$0xff] }
 0x122   :  { %v418_v21 = vsel %vm395_vm0, %v1404_v22, %v1403_v63 }
 0x123   :  { %v541_v38 = vmul.f32 %v1081_v51, %v509_v15  ;;  %v540_v25 = vmul.f32 %v1081_v51, %v508_v46  ;;  %v334_v26 = vpop.permute.xlu1 %333  ;;  %v332_v39 = vpop.permute.xlu0 %331  ;;  %v451_v53 = vsel %vm428_vm1, %v418_v21, %v1047_v52 }
 0x124   :  { %v479_v3 = vsel %vm461_vm2, %v446_v47, %v334_v26  ;;  %v478_v16 = vsel %vm461_vm2, %v445_v7, %v332_v39  ;;  %v1406_v7 = vld [vmem:[#allocation14_spill] sm:$0xff]  ;;  %v1409_v39 = vld [vmem:[#allocation40_spill] sm:$0xff] }
 0x125   :  { %573 = vst [vmem:[#allocation5 + $0x78] sm:$0xff] %v541_v38  ;;  %572 = vst [vmem:[#allocation5 + $0x70] sm:$0xff] %v540_v25  ;;  %v511_v17 = vsub.f32 %v479_v3, %v1074_v55  ;;  %v510_v48 = vsub.f32 %v478_v16, %v1074_v55  ;;  %v421_v52 = vsel %vm395_vm0, %v1406_v7, %v1405_v20  ;;  %v1407_v38 = vld [vmem:[#allocation29_spill] sm:$0xff]  ;;  %v1408_v25 = vld [vmem:[#allocation15_spill] sm:$0xff] }
 0x126   :  { %v420_v26 = vsel %vm395_vm0, %v1408_v25, %v1407_v38  ;;  %v454_v3 = vsel %vm428_vm1, %v421_v52, %v1409_v39  ;;  %v1410_v16 = vld [vmem:[#allocation41_spill] sm:$0xff]  ;;  %v1428_v20 = vld [vmem:[#allocation47_spill] sm:$0xff] }
 0x127   :  { %v543_v40 = vmul.f32 %v1081_v51, %v511_v17  ;;  %v542_v27 = vmul.f32 %v1081_v51, %v510_v48  ;;  %v338_v41 = vpop.permute.xlu1 %337  ;;  %v336_v57 = vpop.permute.xlu0 %335  ;;  %v453_v17 = vsel %vm428_vm1, %v420_v26, %v1410_v16 }
 0x128   :  { %v481_v61 = vsel %vm461_vm2, %v448_v8, %v338_v41  ;;  %v480_v33 = vsel %vm461_vm2, %v447_v9, %v336_v57  ;;  %v1411_v8 = vld [vmem:[#allocation30_spill] sm:$0xff]  ;;  %v1412_v9 = vld [vmem:[#allocation16_spill] sm:$0xff]  ;;  %v1414_v41 = vld [vmem:[#allocation17_spill] sm:$0xff] }
 0x129   :  { %575 = vst [vmem:[#allocation5 + $0x88] sm:$0xff] %v543_v40  ;;  %574 = vst [vmem:[#allocation5 + $0x80] sm:$0xff] %v542_v27  ;;  %v513_v35 = vsub.f32 %v481_v61, %v1074_v55  ;;  %v512_v18 = vsub.f32 %v480_v33, %v1074_v55  ;;  %v423_v40 = vsel %vm395_vm0, %v1412_v9, %v1411_v8  ;;  %v1413_v27 = vld [vmem:[#allocation31_spill] sm:$0xff]  ;;  %v1415_v61 = vld [vmem:[#allocation42_spill] sm:$0xff] }
 0x12a   :  { %v422_v57 = vsel %vm395_vm0, %v1414_v41, %v1413_v27  ;;  %v456_v33 = vsel %vm428_vm1, %v423_v40, %v1415_v61 }
 0x12b   :  { %v545_v4 = vmul.f32 %v1081_v51, %v513_v35  ;;  %v544_v5 = vmul.f32 %v1081_v51, %v512_v18  ;;  %v342_v36 = vpop.permute.xlu1 %341  ;;  %v340_v37 = vpop.permute.xlu0 %339  ;;  %v1416_v35 = vld [vmem:[#allocation43_spill] sm:$0xff] }
 0x12c   :  { %v483_v62 = vsel %vm461_vm2, %v450_v28, %v342_v36  ;;  %v482_v12 = vsel %vm461_vm2, %v449_v60, %v340_v37  ;;  %v455_v18 = vsel %vm428_vm1, %v422_v57, %v1416_v35  ;;  %v1418_v60 = vld [vmem:[#allocation18_spill] sm:$0xff]  ;;  %v1420_v36 = vld [vmem:[#allocation19_spill] sm:$0xff] }
 0x12d   :  { %577 = vst [vmem:[#allocation5 + $0x98] sm:$0xff] %v545_v4  ;;  %576 = vst [vmem:[#allocation5 + $0x90] sm:$0xff] %v544_v5  ;;  %v515_v13 = vsub.f32 %v483_v62, %v1074_v55  ;;  %v514_v44 = vsub.f32 %v482_v12, %v1074_v55  ;;  %v425_v4 = vsel %vm395_vm0, %v1418_v60, %v1417_v43  ;;  %v1419_v5 = vld [vmem:[#allocation33_spill] sm:$0xff]  ;;  %v1421_v62 = vld [vmem:[#allocation44_spill] sm:$0xff] }
 0x12e   :  { %v424_v37 = vsel %vm395_vm0, %v1420_v36, %v1419_v5  ;;  %v458_v12 = vsel %vm428_vm1, %v425_v4, %v1421_v62 }
 0x12f   :  { %v547_v1 = vmul.f32 %v1081_v51, %v515_v13  ;;  %v546_v14 = vmul.f32 %v1081_v51, %v514_v44  ;;  %v346_v15 = vpop.permute.xlu1 %345  ;;  %v344_v46 = vpop.permute.xlu0 %343  ;;  %v1422_v13 = vld [vmem:[#allocation45_spill] sm:$0xff] }
 0x130   :  { %v485_v23 = vsel %vm461_vm2, %v452_v50, %v346_v15  ;;  %v484_v30 = vsel %vm461_vm2, %v451_v53, %v344_v46  ;;  %v457_v44 = vsel %vm428_vm1, %v424_v37, %v1422_v13  ;;  %v1425_v46 = vld [vmem:[#allocation35_spill] sm:$0xff] }
 0x131   :  { %579 = vst [vmem:[#allocation5 + $0xa8] sm:$0xff] %v547_v1  ;;  %578 = vst [vmem:[#allocation5 + $0xa0] sm:$0xff] %v546_v14  ;;  %v517_v47 = vsub.f32 %v485_v23, %v1074_v55  ;;  %v516_v6 = vsub.f32 %v484_v30, %v1074_v55  ;;  %v1423_v1 = vld [vmem:[#allocation34_spill] sm:$0xff]  ;;  %v1424_v14 = vld [vmem:[#allocation20_spill] sm:$0xff] }
 0x132   :  { %v427_v15 = vsel %vm395_vm0, %v1424_v14, %v1423_v1  ;;  %v1426_v23 = vld [vmem:[#allocation21_spill] sm:$0xff] }
 0x133   :  { %v549_v48 = vmul.f32 %v1081_v51, %v517_v47  ;;  %v548_v31 = vmul.f32 %v1081_v51, %v516_v6  ;;  %v350_v49 = vpop.permute.xlu1 %349  ;;  %v348_v0 = vpop.permute.xlu0 %347  ;;  %v426_v30 = vsel %vm395_vm0, %v1426_v23, %v1425_v46  ;;  %v1427_v47 = vld [vmem:[#allocation46_spill] sm:$0xff] }
 0x134   :  { %v487_v2 = vsel %vm461_vm2, %v454_v3, %v350_v49  ;;  %v486_v32 = vsel %vm461_vm2, %v453_v17, %v348_v0  ;;  %v460_v6 = vsel %vm428_vm1, %v427_v15, %v1427_v47  ;;  %v459_v7 = vsel %vm428_vm1, %v426_v30, %v1428_v20 }
 0x135   :  { %581 = vst [vmem:[#allocation5 + $0xb8] sm:$0xff] %v549_v48  ;;  %580 = vst [vmem:[#allocation5 + $0xb0] sm:$0xff] %v548_v31  ;;  %v519_v34 = vsub.f32 %v487_v2, %v1074_v55  ;;  %v518_v58 = vsub.f32 %v486_v32, %v1074_v55 }
 0x137   :  { %v551_v19 = vmul.f32 %v1081_v51, %v519_v34  ;;  %v550_v59 = vmul.f32 %v1081_v51, %v518_v58  ;;  %v354_v54 = vpop.permute.xlu1 %353  ;;  %v352_v10 = vpop.permute.xlu0 %351 }
 0x138   :  { %v489_v11 = vsel %vm461_vm2, %v456_v33, %v354_v54  ;;  %v488_v42 = vsel %vm461_vm2, %v455_v18, %v352_v10 }
 0x139   :  { %583 = vst [vmem:[#allocation5 + $0xc8] sm:$0xff] %v551_v19  ;;  %582 = vst [vmem:[#allocation5 + $0xc0] sm:$0xff] %v550_v59  ;;  %v521_v24 = vsub.f32 %v489_v11, %v1074_v55  ;;  %v520_v28 = vsub.f32 %v488_v42, %v1074_v55 }
 0x13b   :  { %v553_v29 = vmul.f32 %v1081_v51, %v521_v24  ;;  %v552_v45 = vmul.f32 %v1081_v51, %v520_v28  ;;  %v358_v56 = vpop.permute.xlu1 %357  ;;  %v356_v63 = vpop.permute.xlu0 %355 }
 0x13c   :  { %v491_v22 = vsel %vm461_vm2, %v458_v12, %v358_v56  ;;  %v490_v21 = vsel %vm461_vm2, %v457_v44, %v356_v63 }
 0x13d   :  { %585 = vst [vmem:[#allocation5 + $0xd8] sm:$0xff] %v553_v29  ;;  %584 = vst [vmem:[#allocation5 + $0xd0] sm:$0xff] %v552_v45  ;;  %v523_v50 = vsub.f32 %v491_v22, %v1074_v55  ;;  %v522_v53 = vsub.f32 %v490_v21, %v1074_v55 }
 0x13f   :  { %v555_v52 = vmul.f32 %v1081_v51, %v523_v50  ;;  %v554_v38 = vmul.f32 %v1081_v51, %v522_v53  ;;  %v362_v25 = vpop.permute.xlu1 %361  ;;  %v360_v26 = vpop.permute.xlu0 %359 }
 0x140   :  { %v493_v39 = vsel %vm461_vm2, %v460_v6, %v362_v25  ;;  %v492_v3 = vsel %vm461_vm2, %v459_v7, %v360_v26 }
 0x141   :  { %587 = vst [vmem:[#allocation5 + $0xe8] sm:$0xff] %v555_v52  ;;  %586 = vst [vmem:[#allocation5 + $0xe0] sm:$0xff] %v554_v38  ;;  %v525_v16 = vsub.f32 %v493_v39, %v1074_v55  ;;  %v524_v17 = vsub.f32 %v492_v3, %v1074_v55 }
 0x143   :  { %v557_v48 = vmul.f32 %v1081_v51, %v525_v16  ;;  %v556_v31 = vmul.f32 %v1081_v51, %v524_v17 }
 0x145   :  { %589 = vst [vmem:[#allocation5 + $0xf8] sm:$0xff] %v557_v48  ;;  %588 = vst [vmem:[#allocation5 + $0xf0] sm:$0xff] %v556_v31 }
 0x146   :  { %594 = vsyncadd [#allocation4], 3840  ;;  %s666_s1 = smov [#allocation5]  }
 0x147   :  { %s595_s2 = sshll.u32 %s666_s1, 4  ;;  %s596_s2 = int_to_ptr.vmem [resolvable:$true] %s595_s2 }
 0x148   :  { %s636_s26 = scalar_lea.vmem %s596_s2, 256  ;;  %s640_s27 = scalar_lea.vmem %s596_s2, 4096 }
 0x149   :  { %p637_p5 = scmp.ne.s32.totalorder %s596_s2, %s636_s26  ;;  %p641_p6 = scmp.lt.s32.totalorder %s596_s2, %s596_s2 }
 0x14a   :  { %p642_p7 = scmp.lt.s32.totalorder %s640_s27, %s636_s26 }
 0x14c   :  { %p643_p8 = por %p642_p7, %p641_p6 }
 0x14e   :  { %p644_p9 = pnand %p643_p8, %p637_p5 }
 0x150   :  { %647 = shalt.err (!%p644_p9)
}
 0x151   :  { %601 = dma.vmem_to_hbm [thread:$0]  %s596_s2, 256, %s1334_s3, [#allocation4], %s661_s16, %s661_s16, %s662_s17  }
 0x152   :  { %658 = dma.done.wait [#allocation4], 4096  }
 0x153   :  { %659 = vsyncadd [#allocation4], 4294963200 }
 0x154   :  { %605 = vsyncpa [#allocation3], 1 }
 0x155   :  { %606 = vsyncpa [#allocation4], 1 }

</bundles_post_ra>
